<compile_context>
chip_gen: v5e
topology: v5e:2x2
jax: 0.10.0
libtpu: 0.0.40
codegen_flags: <defaults>
</compile_context>

<pallas_src>
import functools

import jax
import jax.numpy as jnp
import numpy as np
from jax.experimental import pallas as pl
from jax.experimental.pallas import tpu as pltpu


def attention_gate_kernel(g_ref, x_ref, wg_ref, bg_ref, wx_ref, bx_ref,
                          wpsi_ref, bpsi_ref, out_ref, *, F_g, F_l):
    # Grid: (batch, hw-tile) -- both parallel.
    wg = wg_ref[...]                                  # (F_int, F_g)

    # ---- W_g branch: 1x1 conv on each of the 4 pool-window positions, running max
    gmax = None
    for p in range(4):                                # static unroll
        gm = g_ref[0, p].astype(jnp.float32)          # (F_g, HWt)   lanes = pixels
        g1 = wg[:, 0:1] * gm[0:1, :]                  # (F_int, HWt) VPU broadcast-MAC
        for c in range(1, F_g):                       # static unroll, F_g small
            g1 = g1 + wg[:, c:c + 1] * gm[c:c + 1, :]
        gmax = g1 if gmax is None else jnp.maximum(gmax, g1)
    gmax = gmax + bg_ref[...]                         # (F_int, 1) broadcasts over lanes

    # ---- W_x branch: 1x1 conv (+ folded BN) ------------------------------------
    xm = x_ref[0].astype(jnp.float32)                 # (F_l, HWt)
    wx = wx_ref[...]                                  # (F_int, F_l)
    x1 = wx[:, 0:1] * xm[0:1, :]
    for c in range(1, F_l):
        x1 = x1 + wx[:, c:c + 1] * xm[c:c + 1, :]
    x1 = x1 + bx_ref[...]                             # (F_int, 1)

    # ---- relu, psi 1x1 conv (+ folded BN), sigmoid, gate ------------------------
    psi_pre = jnp.maximum(gmax + x1, 0.0)                               # (F_int, HWt)
    # psi 1x1 conv: per-channel scale + sublane reduction (no M=1 matmul).
    logit = jnp.sum(psi_pre * wpsi_ref[...], axis=0, keepdims=True) \
        + bpsi_ref[...]                                                 # (1, HWt)
    psi = jax.nn.sigmoid(logit)                                         # EUP
    out_ref[0] = (xm * psi).astype(out_ref.dtype)                       # (F_l, HWt)


def _pick_hw_tile(hw, F_g, F_l, F_int, vmem_budget_bytes=8 * 1024 * 1024):
    """Largest multiple of 128 dividing hw that keeps pipelined blocks in budget."""
    if hw % 128 != 0:
        return hw
    # f32 bytes per pixel lane: g block (4 window positions, double-buffered),
    # x block + out block (double-buffered), plus in-kernel intermediates.
    bytes_per_lane = 4 * (4 * F_g * 2 + F_l * 2 * 2 + 3 * F_int)
    t = (vmem_budget_bytes // max(bytes_per_lane, 1)) // 128 * 128
    t = max(128, min(t, 2048, hw))
    while hw % t != 0:
        t -= 128
    return t


def attention_gate(g_nchw, x_nchw, wg, bg, wx, bx, wpsi, bpsi):
    """g_nchw: (B, F_g, 2H, 2W), x_nchw: (B, F_l, H, W) -> (B, F_l, H, W).

    Weights are PyTorch-layout 1x1 convs (C_out, C_in) with BN folded in:
      wg: (F_int, F_g), bg: (F_int,), wx: (F_int, F_l), bx: (F_int,),
      wpsi: (1, F_int), bpsi: (1,).
    """
    B, F_g, Hg, Wg_sp = g_nchw.shape
    _, F_l, H, W = x_nchw.shape
    assert Hg == 2 * H and Wg_sp == 2 * W
    F_int = wg.shape[0]
    HW = H * W

    # ---- layout glue (channels-first, lane-dense) --------------------------------
    # x / out: free reshapes of NCHW (no data movement).
    x_flat = x_nchw.reshape(B, F_l, HW)
    # g: window-position-major rearrangement (single transpose of the largest
    # tensor; allow_input_fusion hints XLA to fuse it into the kernel input).
    # g_win[b, p, c, h*W + w] = g[b, c, 2h + dr, 2w + dc],  p = 2*dr + dc
    g_win = (g_nchw.reshape(B, F_g, H, 2, W, 2)
             .transpose(0, 3, 5, 1, 2, 4)
             .reshape(B, 4, F_g, HW))

    bg2 = bg.reshape(F_int, 1)
    bx2 = bx.reshape(F_int, 1)
    wpsi_col = wpsi.reshape(F_int, 1)
    bpsi2 = bpsi.reshape(1, 1)

    hw_t = _pick_hw_tile(HW, F_g, F_l, F_int)
    n_t = HW // hw_t

    kernel = functools.partial(attention_gate_kernel, F_g=F_g, F_l=F_l)

    out_flat = pl.pallas_call(
        kernel,
        out_shape=jax.ShapeDtypeStruct((B, F_l, HW), x_nchw.dtype),
        grid=(B, n_t),
        in_specs=[
            pl.BlockSpec((1, 4, F_g, hw_t), lambda b, t: (b, 0, 0, t)),
            pl.BlockSpec((1, F_l, hw_t), lambda b, t: (b, 0, t)),
            pl.BlockSpec((F_int, F_g), lambda b, t: (0, 0)),
            pl.BlockSpec((F_int, 1), lambda b, t: (0, 0)),
            pl.BlockSpec((F_int, F_l), lambda b, t: (0, 0)),
            pl.BlockSpec((F_int, 1), lambda b, t: (0, 0)),
            pl.BlockSpec((F_int, 1), lambda b, t: (0, 0)),
            pl.BlockSpec((1, 1), lambda b, t: (0, 0)),
        ],
        out_specs=pl.BlockSpec((1, F_l, hw_t), lambda b, t: (b, 0, t)),
        compiler_params=pltpu.CompilerParams(
            dimension_semantics=("parallel", "parallel"),
            allow_input_fusion=[True, False, False, False, False, False, False, False],
        ),
    )(g_win, x_flat, wg, bg2, wx, bx2, wpsi_col, bpsi2)

    return out_flat.reshape(B, F_l, H, W)


def fold_bn(conv_w, conv_b, gamma, beta, mean, var, eps=1e-5):
    """Fold inference-mode BatchNorm into a 1x1 conv. conv_w: (C_out, C_in)."""
    scale = gamma / jnp.sqrt(var + eps)
    w_eff = conv_w * scale[:, None]
    b_eff = scale * (conv_b - mean) + beta
    return w_eff, b_eff


def reference(g, x, wg, bg, wx, bx, wpsi, bpsi):
    """Pure-JAX NCHW reference of the folded AttentionGate (eval-mode BN)."""
    hi = jax.lax.Precision.HIGHEST
    g1 = jnp.einsum('oc,bchw->bohw', wg, g, precision=hi) + bg[None, :, None, None]
    B, C, Hg, Wg_sp = g1.shape
    g1p = g1.reshape(B, C, Hg // 2, 2, Wg_sp // 2, 2).max(axis=(3, 5))
    x1 = jnp.einsum('oc,bchw->bohw', wx, x, precision=hi) + bx[None, :, None, None]
    psi_pre = jnp.maximum(g1p + x1, 0.0)
    logit = jnp.einsum('oc,bchw->bohw', wpsi, psi_pre, precision=hi) \
        + bpsi[None, :, None, None]
    psi = jax.nn.sigmoid(logit)
    return x * psi


if __name__ == "__main__":
    B, F_g, F_l, F_int, H, W = 2, 4, 4, 8, 16, 16

    key = jax.random.PRNGKey(0)
    ks = jax.random.split(key, 14)

    # Conv2d(kernel_size=1) weights (PyTorch layout (C_out, C_in, 1, 1) squeezed).
    wg_conv = jax.random.normal(ks[0], (F_int, F_g), jnp.float32) * 0.2
    bg_conv = jax.random.normal(ks[1], (F_int,), jnp.float32) * 0.1
    wx_conv = jax.random.normal(ks[2], (F_int, F_l), jnp.float32) * 0.2
    bx_conv = jax.random.normal(ks[3], (F_int,), jnp.float32) * 0.1
    wpsi_conv = jax.random.normal(ks[4], (1, F_int), jnp.float32) * 0.2
    bpsi_conv = jax.random.normal(ks[5], (1,), jnp.float32) * 0.1

    # BatchNorm params: random affine, running stats at fresh-init values (0 / 1).
    gg = jnp.abs(jax.random.normal(ks[6], (F_int,))) + 0.5
    bgn = jax.random.normal(ks[7], (F_int,)) * 0.1
    gx = jnp.abs(jax.random.normal(ks[8], (F_int,))) + 0.5
    bxn = jax.random.normal(ks[9], (F_int,)) * 0.1
    gp = jnp.abs(jax.random.normal(ks[10], (1,))) + 0.5
    bpn = jax.random.normal(ks[11], (1,)) * 0.1
    zf, of = jnp.zeros((F_int,)), jnp.ones((F_int,))
    z1, o1 = jnp.zeros((1,)), jnp.ones((1,))

    wg_eff, bg_eff = fold_bn(wg_conv, bg_conv, gg, bgn, zf, of)
    wx_eff, bx_eff = fold_bn(wx_conv, bx_conv, gx, bxn, zf, of)
    wpsi_eff, bpsi_eff = fold_bn(wpsi_conv, bpsi_conv, gp, bpn, z1, o1)

    g = jax.random.normal(ks[12], (B, F_g, 2 * H, 2 * W), jnp.float32)
    x = jax.random.normal(ks[13], (B, F_l, H, W), jnp.float32)

    out = attention_gate(g, x, wg_eff, bg_eff, wx_eff, bx_eff, wpsi_eff, bpsi_eff)
    out = jax.block_until_ready(out)

    ref = reference(g, x, wg_eff, bg_eff, wx_eff, bx_eff, wpsi_eff, bpsi_eff)
    np.testing.assert_allclose(np.asarray(out), np.asarray(ref), rtol=1e-4, atol=1e-4)

    print("KERNEL_OK")
</pallas_src>

<mosaic_0001>
module attributes {stable_mosaic.version = 11 : i64} {
  func.func @attention_gate_kernel(%arg0: i32, %arg1: i32, %arg2: memref<1x4x4x256xf32, #tpu.memory_space<vmem>>, %arg3: memref<1x4x256xf32, #tpu.memory_space<vmem>>, %arg4: memref<8x4xf32, #tpu.memory_space<vmem>>, %arg5: memref<8x1xf32, #tpu.memory_space<vmem>>, %arg6: memref<8x4xf32, #tpu.memory_space<vmem>>, %arg7: memref<8x1xf32, #tpu.memory_space<vmem>>, %arg8: memref<8x1xf32, #tpu.memory_space<vmem>>, %arg9: memref<1x1xf32, #tpu.memory_space<vmem>>, %arg10: memref<1x4x256xf32, #tpu.memory_space<vmem>>) attributes {dimension_semantics = [#tpu.dimension_semantics<parallel>, #tpu.dimension_semantics<parallel>], iteration_bounds = array<i64: 2, 1>, scalar_prefetch = 0 : i64, scratch_operands = 0 : i64, tpu.core_type = #tpu.core_type<tc>, window_params = [{transform_indices = @transform_0, window_bounds = array<i64: 1, 4, 4, 256>}, {transform_indices = @transform_1, window_bounds = array<i64: 1, 4, 256>}, {pipeline_mode = #tpu.pipeline_mode<synchronous>, transform_indices = @transform_2, window_bounds = array<i64: 8, 4>}, {pipeline_mode = #tpu.pipeline_mode<synchronous>, transform_indices = @transform_3, window_bounds = array<i64: 8, 1>}, {pipeline_mode = #tpu.pipeline_mode<synchronous>, transform_indices = @transform_4, window_bounds = array<i64: 8, 4>}, {pipeline_mode = #tpu.pipeline_mode<synchronous>, transform_indices = @transform_5, window_bounds = array<i64: 8, 1>}, {pipeline_mode = #tpu.pipeline_mode<synchronous>, transform_indices = @transform_6, window_bounds = array<i64: 8, 1>}, {pipeline_mode = #tpu.pipeline_mode<synchronous>, transform_indices = @transform_7, window_bounds = array<i64: 1, 1>}, {transform_indices = @transform_8, window_bounds = array<i64: 1, 4, 256>}]} {
    %c0 = arith.constant 0 : index
    %c0_0 = arith.constant 0 : index
    %0 = vector.load %arg4[%c0, %c0_0] : memref<8x4xf32, #tpu.memory_space<vmem>>, vector<8x4xf32>
    %c0_1 = arith.constant 0 : index
    %c0_2 = arith.constant 0 : index
    %c0_3 = arith.constant 0 : index
    %c0_4 = arith.constant 0 : index
    %1 = vector.load %arg2[%c0_1, %c0_2, %c0_3, %c0_4] : memref<1x4x4x256xf32, #tpu.memory_space<vmem>>, vector<1x1x4x256xf32>
    %2 = vector.shape_cast %1 : vector<1x1x4x256xf32> to vector<4x256xf32>
    %3 = vector.extract_strided_slice %0 {offsets = [0, 0], sizes = [8, 1], strides = [1, 1]} : vector<8x4xf32> to vector<8x1xf32>
    %4 = vector.extract_strided_slice %2 {offsets = [0, 0], sizes = [1, 256], strides = [1, 1]} : vector<4x256xf32> to vector<1x256xf32>
    %5 = vector.broadcast %3 : vector<8x1xf32> to vector<8x256xf32>
    %6 = vector.broadcast %4 : vector<1x256xf32> to vector<8x256xf32>
    %7 = arith.mulf %5, %6 : vector<8x256xf32>
    %8 = vector.extract_strided_slice %0 {offsets = [0, 1], sizes = [8, 1], strides = [1, 1]} : vector<8x4xf32> to vector<8x1xf32>
    %9 = vector.extract_strided_slice %2 {offsets = [1, 0], sizes = [1, 256], strides = [1, 1]} : vector<4x256xf32> to vector<1x256xf32>
    %10 = vector.broadcast %8 : vector<8x1xf32> to vector<8x256xf32>
    %11 = vector.broadcast %9 : vector<1x256xf32> to vector<8x256xf32>
    %12 = arith.mulf %10, %11 : vector<8x256xf32>
    %13 = arith.addf %7, %12 : vector<8x256xf32>
    %14 = vector.extract_strided_slice %0 {offsets = [0, 2], sizes = [8, 1], strides = [1, 1]} : vector<8x4xf32> to vector<8x1xf32>
    %15 = vector.extract_strided_slice %2 {offsets = [2, 0], sizes = [1, 256], strides = [1, 1]} : vector<4x256xf32> to vector<1x256xf32>
    %16 = vector.broadcast %14 : vector<8x1xf32> to vector<8x256xf32>
    %17 = vector.broadcast %15 : vector<1x256xf32> to vector<8x256xf32>
    %18 = arith.mulf %16, %17 : vector<8x256xf32>
    %19 = arith.addf %13, %18 : vector<8x256xf32>
    %20 = vector.extract_strided_slice %0 {offsets = [0, 3], sizes = [8, 1], strides = [1, 1]} : vector<8x4xf32> to vector<8x1xf32>
    %21 = vector.extract_strided_slice %2 {offsets = [3, 0], sizes = [1, 256], strides = [1, 1]} : vector<4x256xf32> to vector<1x256xf32>
    %22 = vector.broadcast %20 : vector<8x1xf32> to vector<8x256xf32>
    %23 = vector.broadcast %21 : vector<1x256xf32> to vector<8x256xf32>
    %24 = arith.mulf %22, %23 : vector<8x256xf32>
    %25 = arith.addf %19, %24 : vector<8x256xf32>
    %c0_5 = arith.constant 0 : index
    %c1 = arith.constant 1 : index
    %c0_6 = arith.constant 0 : index
    %c0_7 = arith.constant 0 : index
    %26 = vector.load %arg2[%c0_5, %c1, %c0_6, %c0_7] : memref<1x4x4x256xf32, #tpu.memory_space<vmem>>, vector<1x1x4x256xf32>
    %27 = vector.shape_cast %26 : vector<1x1x4x256xf32> to vector<4x256xf32>
    %28 = vector.extract_strided_slice %0 {offsets = [0, 0], sizes = [8, 1], strides = [1, 1]} : vector<8x4xf32> to vector<8x1xf32>
    %29 = vector.extract_strided_slice %27 {offsets = [0, 0], sizes = [1, 256], strides = [1, 1]} : vector<4x256xf32> to vector<1x256xf32>
    %30 = vector.broadcast %28 : vector<8x1xf32> to vector<8x256xf32>
    %31 = vector.broadcast %29 : vector<1x256xf32> to vector<8x256xf32>
    %32 = arith.mulf %30, %31 : vector<8x256xf32>
    %33 = vector.extract_strided_slice %0 {offsets = [0, 1], sizes = [8, 1], strides = [1, 1]} : vector<8x4xf32> to vector<8x1xf32>
    %34 = vector.extract_strided_slice %27 {offsets = [1, 0], sizes = [1, 256], strides = [1, 1]} : vector<4x256xf32> to vector<1x256xf32>
    %35 = vector.broadcast %33 : vector<8x1xf32> to vector<8x256xf32>
    %36 = vector.broadcast %34 : vector<1x256xf32> to vector<8x256xf32>
    %37 = arith.mulf %35, %36 : vector<8x256xf32>
    %38 = arith.addf %32, %37 : vector<8x256xf32>
    %39 = vector.extract_strided_slice %0 {offsets = [0, 2], sizes = [8, 1], strides = [1, 1]} : vector<8x4xf32> to vector<8x1xf32>
    %40 = vector.extract_strided_slice %27 {offsets = [2, 0], sizes = [1, 256], strides = [1, 1]} : vector<4x256xf32> to vector<1x256xf32>
    %41 = vector.broadcast %39 : vector<8x1xf32> to vector<8x256xf32>
    %42 = vector.broadcast %40 : vector<1x256xf32> to vector<8x256xf32>
    %43 = arith.mulf %41, %42 : vector<8x256xf32>
    %44 = arith.addf %38, %43 : vector<8x256xf32>
    %45 = vector.extract_strided_slice %0 {offsets = [0, 3], sizes = [8, 1], strides = [1, 1]} : vector<8x4xf32> to vector<8x1xf32>
    %46 = vector.extract_strided_slice %27 {offsets = [3, 0], sizes = [1, 256], strides = [1, 1]} : vector<4x256xf32> to vector<1x256xf32>
    %47 = vector.broadcast %45 : vector<8x1xf32> to vector<8x256xf32>
    %48 = vector.broadcast %46 : vector<1x256xf32> to vector<8x256xf32>
    %49 = arith.mulf %47, %48 : vector<8x256xf32>
    %50 = arith.addf %44, %49 : vector<8x256xf32>
    %51 = arith.maximumf %25, %50 : vector<8x256xf32>
    %c0_8 = arith.constant 0 : index
    %c2 = arith.constant 2 : index
    %c0_9 = arith.constant 0 : index
    %c0_10 = arith.constant 0 : index
    %52 = vector.load %arg2[%c0_8, %c2, %c0_9, %c0_10] : memref<1x4x4x256xf32, #tpu.memory_space<vmem>>, vector<1x1x4x256xf32>
    %53 = vector.shape_cast %52 : vector<1x1x4x256xf32> to vector<4x256xf32>
    %54 = vector.extract_strided_slice %0 {offsets = [0, 0], sizes = [8, 1], strides = [1, 1]} : vector<8x4xf32> to vector<8x1xf32>
    %55 = vector.extract_strided_slice %53 {offsets = [0, 0], sizes = [1, 256], strides = [1, 1]} : vector<4x256xf32> to vector<1x256xf32>
    %56 = vector.broadcast %54 : vector<8x1xf32> to vector<8x256xf32>
    %57 = vector.broadcast %55 : vector<1x256xf32> to vector<8x256xf32>
    %58 = arith.mulf %56, %57 : vector<8x256xf32>
    %59 = vector.extract_strided_slice %0 {offsets = [0, 1], sizes = [8, 1], strides = [1, 1]} : vector<8x4xf32> to vector<8x1xf32>
    %60 = vector.extract_strided_slice %53 {offsets = [1, 0], sizes = [1, 256], strides = [1, 1]} : vector<4x256xf32> to vector<1x256xf32>
    %61 = vector.broadcast %59 : vector<8x1xf32> to vector<8x256xf32>
    %62 = vector.broadcast %60 : vector<1x256xf32> to vector<8x256xf32>
    %63 = arith.mulf %61, %62 : vector<8x256xf32>
    %64 = arith.addf %58, %63 : vector<8x256xf32>
    %65 = vector.extract_strided_slice %0 {offsets = [0, 2], sizes = [8, 1], strides = [1, 1]} : vector<8x4xf32> to vector<8x1xf32>
    %66 = vector.extract_strided_slice %53 {offsets = [2, 0], sizes = [1, 256], strides = [1, 1]} : vector<4x256xf32> to vector<1x256xf32>
    %67 = vector.broadcast %65 : vector<8x1xf32> to vector<8x256xf32>
    %68 = vector.broadcast %66 : vector<1x256xf32> to vector<8x256xf32>
    %69 = arith.mulf %67, %68 : vector<8x256xf32>
    %70 = arith.addf %64, %69 : vector<8x256xf32>
    %71 = vector.extract_strided_slice %0 {offsets = [0, 3], sizes = [8, 1], strides = [1, 1]} : vector<8x4xf32> to vector<8x1xf32>
    %72 = vector.extract_strided_slice %53 {offsets = [3, 0], sizes = [1, 256], strides = [1, 1]} : vector<4x256xf32> to vector<1x256xf32>
    %73 = vector.broadcast %71 : vector<8x1xf32> to vector<8x256xf32>
    %74 = vector.broadcast %72 : vector<1x256xf32> to vector<8x256xf32>
    %75 = arith.mulf %73, %74 : vector<8x256xf32>
    %76 = arith.addf %70, %75 : vector<8x256xf32>
    %77 = arith.maximumf %51, %76 : vector<8x256xf32>
    %c0_11 = arith.constant 0 : index
    %c3 = arith.constant 3 : index
    %c0_12 = arith.constant 0 : index
    %c0_13 = arith.constant 0 : index
    %78 = vector.load %arg2[%c0_11, %c3, %c0_12, %c0_13] : memref<1x4x4x256xf32, #tpu.memory_space<vmem>>, vector<1x1x4x256xf32>
    %79 = vector.shape_cast %78 : vector<1x1x4x256xf32> to vector<4x256xf32>
    %80 = vector.extract_strided_slice %0 {offsets = [0, 0], sizes = [8, 1], strides = [1, 1]} : vector<8x4xf32> to vector<8x1xf32>
    %81 = vector.extract_strided_slice %79 {offsets = [0, 0], sizes = [1, 256], strides = [1, 1]} : vector<4x256xf32> to vector<1x256xf32>
    %82 = vector.broadcast %80 : vector<8x1xf32> to vector<8x256xf32>
    %83 = vector.broadcast %81 : vector<1x256xf32> to vector<8x256xf32>
    %84 = arith.mulf %82, %83 : vector<8x256xf32>
    %85 = vector.extract_strided_slice %0 {offsets = [0, 1], sizes = [8, 1], strides = [1, 1]} : vector<8x4xf32> to vector<8x1xf32>
    %86 = vector.extract_strided_slice %79 {offsets = [1, 0], sizes = [1, 256], strides = [1, 1]} : vector<4x256xf32> to vector<1x256xf32>
    %87 = vector.broadcast %85 : vector<8x1xf32> to vector<8x256xf32>
    %88 = vector.broadcast %86 : vector<1x256xf32> to vector<8x256xf32>
    %89 = arith.mulf %87, %88 : vector<8x256xf32>
    %90 = arith.addf %84, %89 : vector<8x256xf32>
    %91 = vector.extract_strided_slice %0 {offsets = [0, 2], sizes = [8, 1], strides = [1, 1]} : vector<8x4xf32> to vector<8x1xf32>
    %92 = vector.extract_strided_slice %79 {offsets = [2, 0], sizes = [1, 256], strides = [1, 1]} : vector<4x256xf32> to vector<1x256xf32>
    %93 = vector.broadcast %91 : vector<8x1xf32> to vector<8x256xf32>
    %94 = vector.broadcast %92 : vector<1x256xf32> to vector<8x256xf32>
    %95 = arith.mulf %93, %94 : vector<8x256xf32>
    %96 = arith.addf %90, %95 : vector<8x256xf32>
    %97 = vector.extract_strided_slice %0 {offsets = [0, 3], sizes = [8, 1], strides = [1, 1]} : vector<8x4xf32> to vector<8x1xf32>
    %98 = vector.extract_strided_slice %79 {offsets = [3, 0], sizes = [1, 256], strides = [1, 1]} : vector<4x256xf32> to vector<1x256xf32>
    %99 = vector.broadcast %97 : vector<8x1xf32> to vector<8x256xf32>
    %100 = vector.broadcast %98 : vector<1x256xf32> to vector<8x256xf32>
    %101 = arith.mulf %99, %100 : vector<8x256xf32>
    %102 = arith.addf %96, %101 : vector<8x256xf32>
    %103 = arith.maximumf %77, %102 : vector<8x256xf32>
    %c0_14 = arith.constant 0 : index
    %c0_15 = arith.constant 0 : index
    %104 = vector.load %arg5[%c0_14, %c0_15] : memref<8x1xf32, #tpu.memory_space<vmem>>, vector<8x1xf32>
    %105 = vector.broadcast %104 : vector<8x1xf32> to vector<8x256xf32>
    %106 = arith.addf %103, %105 : vector<8x256xf32>
    %c0_16 = arith.constant 0 : index
    %c0_17 = arith.constant 0 : index
    %c0_18 = arith.constant 0 : index
    %107 = vector.load %arg3[%c0_16, %c0_17, %c0_18] : memref<1x4x256xf32, #tpu.memory_space<vmem>>, vector<1x4x256xf32>
    %108 = vector.shape_cast %107 : vector<1x4x256xf32> to vector<4x256xf32>
    %c0_19 = arith.constant 0 : index
    %c0_20 = arith.constant 0 : index
    %109 = vector.load %arg6[%c0_19, %c0_20] : memref<8x4xf32, #tpu.memory_space<vmem>>, vector<8x4xf32>
    %110 = vector.extract_strided_slice %109 {offsets = [0, 0], sizes = [8, 1], strides = [1, 1]} : vector<8x4xf32> to vector<8x1xf32>
    %111 = vector.extract_strided_slice %108 {offsets = [0, 0], sizes = [1, 256], strides = [1, 1]} : vector<4x256xf32> to vector<1x256xf32>
    %112 = vector.broadcast %110 : vector<8x1xf32> to vector<8x256xf32>
    %113 = vector.broadcast %111 : vector<1x256xf32> to vector<8x256xf32>
    %114 = arith.mulf %112, %113 : vector<8x256xf32>
    %115 = vector.extract_strided_slice %109 {offsets = [0, 1], sizes = [8, 1], strides = [1, 1]} : vector<8x4xf32> to vector<8x1xf32>
    %116 = vector.extract_strided_slice %108 {offsets = [1, 0], sizes = [1, 256], strides = [1, 1]} : vector<4x256xf32> to vector<1x256xf32>
    %117 = vector.broadcast %115 : vector<8x1xf32> to vector<8x256xf32>
    %118 = vector.broadcast %116 : vector<1x256xf32> to vector<8x256xf32>
    %119 = arith.mulf %117, %118 : vector<8x256xf32>
    %120 = arith.addf %114, %119 : vector<8x256xf32>
    %121 = vector.extract_strided_slice %109 {offsets = [0, 2], sizes = [8, 1], strides = [1, 1]} : vector<8x4xf32> to vector<8x1xf32>
    %122 = vector.extract_strided_slice %108 {offsets = [2, 0], sizes = [1, 256], strides = [1, 1]} : vector<4x256xf32> to vector<1x256xf32>
    %123 = vector.broadcast %121 : vector<8x1xf32> to vector<8x256xf32>
    %124 = vector.broadcast %122 : vector<1x256xf32> to vector<8x256xf32>
    %125 = arith.mulf %123, %124 : vector<8x256xf32>
    %126 = arith.addf %120, %125 : vector<8x256xf32>
    %127 = vector.extract_strided_slice %109 {offsets = [0, 3], sizes = [8, 1], strides = [1, 1]} : vector<8x4xf32> to vector<8x1xf32>
    %128 = vector.extract_strided_slice %108 {offsets = [3, 0], sizes = [1, 256], strides = [1, 1]} : vector<4x256xf32> to vector<1x256xf32>
    %129 = vector.broadcast %127 : vector<8x1xf32> to vector<8x256xf32>
    %130 = vector.broadcast %128 : vector<1x256xf32> to vector<8x256xf32>
    %131 = arith.mulf %129, %130 : vector<8x256xf32>
    %132 = arith.addf %126, %131 : vector<8x256xf32>
    %c0_21 = arith.constant 0 : index
    %c0_22 = arith.constant 0 : index
    %133 = vector.load %arg7[%c0_21, %c0_22] : memref<8x1xf32, #tpu.memory_space<vmem>>, vector<8x1xf32>
    %134 = vector.broadcast %133 : vector<8x1xf32> to vector<8x256xf32>
    %135 = arith.addf %132, %134 : vector<8x256xf32>
    %136 = arith.addf %106, %135 : vector<8x256xf32>
    %cst = arith.constant 0.000000e+00 : f32
    %137 = vector.broadcast %cst : f32 to vector<8x256xf32>
    %138 = arith.maximumf %136, %137 : vector<8x256xf32>
    %c0_23 = arith.constant 0 : index
    %c0_24 = arith.constant 0 : index
    %139 = vector.load %arg8[%c0_23, %c0_24] : memref<8x1xf32, #tpu.memory_space<vmem>>, vector<8x1xf32>
    %140 = vector.broadcast %139 : vector<8x1xf32> to vector<8x256xf32>
    %141 = arith.mulf %138, %140 : vector<8x256xf32>
    %cst_25 = arith.constant dense<0.000000e+00> : vector<256xf32>
    %142 = vector.multi_reduction <add>, %141, %cst_25 [0] : vector<8x256xf32> to vector<256xf32>
    %143 = vector.shape_cast %142 : vector<256xf32> to vector<1x256xf32>
    %c0_26 = arith.constant 0 : index
    %c0_27 = arith.constant 0 : index
    %144 = vector.load %arg9[%c0_26, %c0_27] : memref<1x1xf32, #tpu.memory_space<vmem>>, vector<1x1xf32>
    %145 = vector.broadcast %144 : vector<1x1xf32> to vector<1x256xf32>
    %146 = arith.addf %143, %145 : vector<1x256xf32>
    %147 = arith.negf %146 : vector<1x256xf32>
    %148 = math.exp %147 : vector<1x256xf32>
    %cst_28 = arith.constant 1.000000e+00 : f32
    %149 = vector.broadcast %cst_28 : f32 to vector<1x256xf32>
    %150 = arith.addf %149, %148 : vector<1x256xf32>
    %151 = arith.divf %149, %150 : vector<1x256xf32>
    %152 = vector.broadcast %151 : vector<1x256xf32> to vector<4x256xf32>
    %153 = arith.mulf %108, %152 : vector<4x256xf32>
    %c0_29 = arith.constant 0 : index
    %c0_30 = arith.constant 0 : index
    %c0_31 = arith.constant 0 : index
    %154 = vector.load %arg10[%c0_29, %c0_30, %c0_31] : memref<1x4x256xf32, #tpu.memory_space<vmem>>, vector<1x4x256xf32>
    %155 = vector.shape_cast %154 : vector<1x4x256xf32> to vector<4x256xf32>
    %156 = vector.shape_cast %153 : vector<4x256xf32> to vector<1x4x256xf32>
    tpu.vector_store %arg10[%c0_29, %c0_30, %c0_31], %156 {strides = array<i32>} : memref<1x4x256xf32, #tpu.memory_space<vmem>>, vector<1x4x256xf32>,
    return
  }
  func.func @transform_0(%arg0: i32, %arg1: i32) -> (i32, i32, i32, i32) {
    %c0_i32 = arith.constant 0 : i32
    %c0_i32_0 = arith.constant 0 : i32
    %c0_i32_1 = arith.constant 0 : i32
    return %arg0, %c0_i32, %c0_i32_0, %arg1 : i32, i32, i32, i32
  }
  func.func @transform_1(%arg0: i32, %arg1: i32) -> (i32, i32, i32) {
    %c0_i32 = arith.constant 0 : i32
    %c0_i32_0 = arith.constant 0 : i32
    return %arg0, %c0_i32, %arg1 : i32, i32, i32
  }
  func.func @transform_2(%arg0: i32, %arg1: i32) -> (i32, i32) {
    %c0_i32 = arith.constant 0 : i32
    %c0_i32_0 = arith.constant 0 : i32
    %c0_i32_1 = arith.constant 0 : i32
    return %c0_i32, %c0_i32_0 : i32, i32
  }
  func.func @transform_3(%arg0: i32, %arg1: i32) -> (i32, i32) {
    %c0_i32 = arith.constant 0 : i32
    %c0_i32_0 = arith.constant 0 : i32
    %c0_i32_1 = arith.constant 0 : i32
    return %c0_i32, %c0_i32_0 : i32, i32
  }
  func.func @transform_4(%arg0: i32, %arg1: i32) -> (i32, i32) {
    %c0_i32 = arith.constant 0 : i32
    %c0_i32_0 = arith.constant 0 : i32
    %c0_i32_1 = arith.constant 0 : i32
    return %c0_i32, %c0_i32_0 : i32, i32
  }
  func.func @transform_5(%arg0: i32, %arg1: i32) -> (i32, i32) {
    %c0_i32 = arith.constant 0 : i32
    %c0_i32_0 = arith.constant 0 : i32
    %c0_i32_1 = arith.constant 0 : i32
    return %c0_i32, %c0_i32_0 : i32, i32
  }
  func.func @transform_6(%arg0: i32, %arg1: i32) -> (i32, i32) {
    %c0_i32 = arith.constant 0 : i32
    %c0_i32_0 = arith.constant 0 : i32
    %c0_i32_1 = arith.constant 0 : i32
    return %c0_i32, %c0_i32_0 : i32, i32
  }
  func.func @transform_7(%arg0: i32, %arg1: i32) -> (i32, i32) {
    %c0_i32 = arith.constant 0 : i32
    %c0_i32_0 = arith.constant 0 : i32
    %c0_i32_1 = arith.constant 0 : i32
    return %c0_i32, %c0_i32_0 : i32, i32
  }
  func.func @transform_8(%arg0: i32, %arg1: i32) -> (i32, i32, i32) {
    %c0_i32 = arith.constant 0 : i32
    %c0_i32_0 = arith.constant 0 : i32
    return %arg0, %c0_i32, %arg1 : i32, i32, i32
  }
}

</mosaic_0001>

<bundles_post_ra>
// kernel: tpu_custom_call.1
= control target key start
LH: loop header
LB: loop body
LE: loop exit
PB: predicated region body
PF: predicated region fallthrough
CT: control target
= control target key end

     0   :  { %s1369_s0 = inlined_call_operand.hbm [shape: f32[2,4,4,256], index: 0, kind: input, shape index: {}]   ;;  %s1370_s1 = inlined_call_operand.vmem [shape: f32[2,4,256], index: 1, kind: input, shape index: {}]   ;;  %s1371_s2 = inlined_call_operand.vmem [shape: f32[8,4], index: 2, kind: input, shape index: {}]   ;;  %s1372_s3 = inlined_call_operand.vmem [shape: f32[8,1], index: 3, kind: input, shape index: {}]   ;;  %s1373_s4 = inlined_call_operand.vmem [shape: f32[8,4], index: 4, kind: input, shape index: {}]   ;;  %s1374_s5 = inlined_call_operand.vmem [shape: f32[8,1], index: 5, kind: input, shape index: {}]   ;;  %s1375_s6 = inlined_call_operand.vmem [shape: f32[8,1], index: 6, kind: input, shape index: {}]   ;;  %s1376_s7 = inlined_call_operand.<no memory space> [shape: f32[1,1], index: 7, kind: input, shape index: {}]   ;;  %s1377_s8 = inlined_call_operand.hbm [shape: f32[2,4,256], index: 8, kind: output, shape index: {}]  }
   0x1   :  { %v13_v0 = vstv %s1376_s7 }
   0x2   :  { %14 = vst [vmem:[#allocation2] sm:$0x1] %v13_v0 }
   0x3   :  { %15 = vsyncpa [#allocation4], 0 }
   0x4   :  { %17 = vsyncpa [#allocation4 + $0x1], 0 }
   0x5   :  { %18 = vsyncpa [#allocation5], 0 }
   0x6   :  { %20 = vsyncpa [#allocation5 + $0x1], 0  ;;  %s1125_s29 = smov 0   ;;  %s1127_s30 = smov 0  }
   0x7   :  { %s1129_s9 = smov 0   ;;  %s1131_s10 = smov 0  }
   0x8   :  { %s1133_s11 = smov 0   ;;  %s1135_s12 = smov 0  }
   0x9 LB: > { %1380 = sst [smem:[#allocation9_spill]] %s1065_s11  ;;  %s845_s7 = sadd.s32 4294967295, %s1069_s12   ;;  %s1069_s12 = sphi %s1135_s12, %s26_s12   ;;  %s1065_s11 = sphi %s1133_s11, %s1389_s11   ;;  %s1061_s10 = sphi %s1131_s10, %s1388_s10   ;;  %s1057_s9 = sphi %s1129_s9, %s1392_s9   ;;  %s1053_s30 = sphi %s1127_s30, %s1391_s30   ;;  %s1049_s29 = sphi %s1125_s29, %s1390_s29  }
   0xa   : > { %s846_s13 = sadd.s32 4294967294, %s1069_s12   ;;  %s38_s14 = sadd.s32 1, %s1065_s11 }
   0xb   : > { %s47_s15 = sadd.s32 1, %s1057_s9  ;;  %p40_p0 = scmp.ge.s32.totalorder %s38_s14, 2 }
   0xc   : > { %p54_p1 = scmp.ne.s32.totalorder %s1057_s9, %s1053_s30  ;;  %p55_p2 = scmp.eq.s32.totalorder %s1069_s12, 0 }
   0xd   : > { %p60_p3 = scmp.ne.s32.totalorder %s1053_s30, %s1049_s29  ;;  %s1394_s14 = smov (%p40_p0, %s38_s14), 0 }
   0xe   : > { %1381 = sst [smem:[#allocation10_spill]] %s1394_s14  ;;  %p1166_p4 = por %p55_p2, %p54_p1 }
   0xf   : > { %p61_p5 = scmp.eq.s32.totalorder %s845_s7, 0  ;;  %s42_s17 = ssub.s32 %s1065_s11, %s1394_s14 }
  0x10   : > { %p240_p6 = scmp.eq.s32.totalorder %s845_s7, 1  ;;  %p45_p7 = scmp.eq.s32.totalorder %s42_s17, 0 }
  0x11   : > { %p1172_p8 = por %p61_p5, %p60_p3  ;;  %p246_p10 = scmp.eq.s32.totalorder %s846_s13, 1 }
  0x12   : > { %p1176_p9 = por %p240_p6, %p54_p1  ;;  %p848_p12 = scmp.ge.s32.totalorder %s1069_s12, 2 }
  0x13   : > { %s1181_s20 = scalar_select %p45_p7, %s1057_s9, %s47_s15  }
  0x14   : > { %p1183_p11 = por %p246_p10, %p60_p3  ;;  %p882_p13 = scmp.lt.s32.totalorder %s1069_s12, 2 }
  0x15   : > { %s284_s22 = sand.u32 1, %s1057_s9   ;;  %s867_s24 = sshll.u32 %s1065_s11, 5 }
  0x16   : > { %s849_s23 = sshll.u32 %s284_s22, 5  ;;  %s295_s27 = scalar_lea.hbm %s1369_s0, %s867_s24 }
  0x17   : > { %s288_s28 = scalar_lea.vmem [#allocation3], %s849_s23  ;;  %s296_s17 = sshll.u32 %s295_s27, 4  ;;  %s297_s17 = int_to_ptr.hbm [resolvable:$true] %s296_s17 }
  0x18   : > { %s298_s7 = sshll.u32 %s288_s28, 4  ;;  %p875_p0 = pnand %p882_p13, %p1166_p4  ;;  %s299_s7 = int_to_ptr.vmem [resolvable:$true] %s298_s7 }
  0x19   : > { %p852_p1 = scmp.ge.s32.totalorder %s1069_s12, 1  ;;  %s285_s13 = scalar_lea.sflag [#allocation4], %s284_s22 }
  0x1a   : > { %s1071_s15 = smov 128   ;;  %s1072_s14 = smov 8  }
  0x1b   : > { %877 = dma.hbm_to_vmem [thread:$0]  (!%p875_p0), %s297_s17, 512, %s299_s7, %s285_s13, %s1071_s15, %s1071_s15, %s1072_s14  }
  0x1c   : > { %p319_p2 = scmp.lt.s32.totalorder %s1069_s12, 3 }
  0x1e   : > { %p320_p3 = pnand %p852_p1, %p319_p2 }
  0x1f   : > { %s1199_s11 = sand.u32 (!%p320_p3), 1, %s1053_s30  }
  0x20   : > { %323 = sbr.rel (%p320_p3) target bundleno = 241 (0xf1), region = 52  ;;  %s853_s23 = sshll.u32 (!%p320_p3), %s1199_s11, 5 }
  0x21   : > { %s326_s24 = scalar_lea.sflag (!%p320_p3), [#allocation4], %s1199_s11  ;;  %s1203_s25 = scalar_lea.vmem (!%p320_p3), [#allocation3], %s853_s23 }
  0x25   : > { %1040 = dma.done.wait (%p1172_p8), %s326_s24, 512  }
  0x26   : > { %1042 = vsyncadd (%p1172_p8), %s326_s24, 4294966784  ;;  %v1073_v1 = vmov 2   ;;  %v1074_v2 = vmov 0   ;;  %v384_v3 = vld [vmem:[%s1371_s2] sm:$0xff]  ;;  %v1075_v5 = vmov 3   ;;  %v1076_v6 = vmov 1  }
  0x27   : > { %940 = vset.pattern.permute.xlu1 %v1073_v1  ;;  %938 = vset.pattern.permute.xlu0 %v1074_v2  ;;  %v580_v4 = vld [vmem:[%s1373_s4] sm:$0xff]  ;;  %p374_p4 = scmp.lt.s32.totalorder %s1061_s10, 1  ;;  %v857_v13 = vld [vmem:[%s1203_s25 + $0x8] sm:$0xff]  ;;  %v1238_v22 = vld [vmem:[%s1203_s25 + $0x10] sm:$0xff]  ;;  %s869_s22 = sshll.u32 %s1061_s10, 3  ;;  %vm719_vm7 = vcmask 1043456  }
  0x28   : > { %942 = vset.pattern.permute.xlu2 %v1074_v2  ;;  %415 = vperm.xlu1 %940, %v384_v3   ;;  %v571_v7 = vld [vmem:[%s1372_s3] sm:$0xff]  ;;  %v463_v20 = vperm.slane %v857_v13, 2  ;;  %v464_v21 = vperm.slane %v857_v13, 6  ;;  %v445_v25 = vperm.slane %v857_v13, 0  ;;  %v446_v26 = vperm.slane %v857_v13, 4  ;;  %s738_s27 = scalar_lea.hbm %s1377_s8, %s869_s22  ;;  %s725_s17 = scalar_lea.sflag [#allocation5], %s1199_s11 }
  0x29   : > { %388 = vperm.xlu0 %938, %v384_v3   ;;  %583 = vperm.xlu2 %942, %v580_v4   ;;  %v637_v8 = vld [vmem:[%s1374_s5] sm:$0xff]  ;;  %s375_s15 = scalar_select %p374_p4, %s1061_s10, 1  ;;  %v488_v29 = vperm.slane %v1238_v22, 0  ;;  %v489_v30 = vperm.slane %v1238_v22, 4  ;;  %v506_v34 = vperm.slane %v1238_v22, 2  ;;  %v507_v35 = vperm.slane %v1238_v22, 6 }
  0x2a   : > { %v649_v9 = vld [vmem:[%s1375_s6] sm:$0xff]  ;;  %v1248_v38 = vperm.slane %v463_v20, 2  ;;  %v1250_v39 = vperm.slane %v464_v21, 2  ;;  %v1256_v42 = vperm.slane %v445_v25, 0  ;;  %v1258_v43 = vperm.slane %v446_v26, 0  ;;  %s742_s7 = sshll.u32 %s738_s27, 4  ;;  %s743_s7 = int_to_ptr.hbm [resolvable:$true] %s742_s7 }
  0x2b   : > { %v669_v10 = vld [vmem:[#allocation2] sm:$0x1]  ;;  %s868_s23 = sshll.u32 %s375_s15, 3  ;;  %v385_v12 = vld [vmem:[%s1203_s25] sm:$0xff]  ;;  %v1260_v46 = vperm.slane %v488_v29, 0  ;;  %v1262_v47 = vperm.slane %v489_v30, 0 }
  0x2c   : > { %s381_s16 = scalar_lea.vmem %s1370_s1, %s868_s23  ;;  %v418_v16 = vperm.slane %v385_v12, 2  ;;  %v419_v17 = vperm.slane %v385_v12, 6  ;;  %v392_v23 = vperm.slane %v385_v12, 0  ;;  %v393_v24 = vperm.slane %v385_v12, 4  ;;  %v859_v48 = vld [vmem:[%s1203_s25 + $0x18] sm:$0xff]  ;;  %s854_s25 = sshll.u32 %s1199_s11, 3 }
  0x2d   : > { %v1229_v11 = vld [vmem:[%s381_s16] sm:$0xff]  ;;  %v404_v44 = vperm.slane %v385_v12, 1  ;;  %v405_v45 = vperm.slane %v385_v12, 5  ;;  %v432_v49 = vperm.slane %v385_v12, 3  ;;  %v433_v50 = vperm.slane %v385_v12, 7  ;;  %s371_s10 = scalar_lea.vmem [#allocation6], %s854_s25 }
  0x2e   : > { %v587_v14 = vperm.slane %v1229_v11, 0  ;;  %v588_v15 = vperm.slane %v1229_v11, 4  ;;  %v599_v18 = vperm.slane %v1229_v11, 1  ;;  %v600_v19 = vperm.slane %v1229_v11, 5  ;;  %s740_s28 = sshll.u32 %s371_s10, 4  ;;  %s1001_s13 = sshra.s32 %s743_s7, 4  ;;  %s741_s28 = int_to_ptr.vmem [resolvable:$true] %s740_s28  ;;  %s1002_s13 = int_to_ptr.hbm [resolvable:$true] %s1001_s13 }
  0x2f   : > { %v1242_v32 = vperm.slane %v418_v16, 2  ;;  %v1244_v33 = vperm.slane %v419_v17, 2  ;;  %v1252_v40 = vperm.slane %v392_v23, 0  ;;  %v1254_v41 = vperm.slane %v393_v24, 0  ;;  %s1003_s15 = scalar_lea.hbm %s1002_s13, 8  ;;  %s1007_s14 = scalar_lea.hbm %s1377_s8, 16 }
  0x30   : > { %941 = vset.pattern.permute.xlu1 %v1075_v5  ;;  %v591_v27 = vperm.slane %v587_v14, 0  ;;  %v592_v28 = vperm.slane %v588_v15, 0  ;;  %v603_v36 = vperm.slane %v599_v18, 1  ;;  %v604_v37 = vperm.slane %v600_v19, 1  ;;  %p1004_p5 = scmp.ne.s32.totalorder %s1002_s13, %s1003_s15  ;;  %p1008_p8 = scmp.lt.s32.totalorder %s1002_s13, %s1377_s8 }
  0x31   : > { %939 = vset.pattern.permute.xlu0 %v1076_v6  ;;  %429 = vperm.xlu1 %941, %v384_v3   ;;  %v453_v51 = vperm.slane %v857_v13, 1  ;;  %v454_v52 = vperm.slane %v857_v13, 5  ;;  %v473_v53 = vperm.slane %v857_v13, 3  ;;  %v474_v54 = vperm.slane %v857_v13, 7  ;;  %p1009_p10 = scmp.lt.s32.totalorder %s1007_s14, %s1003_s15 }
  0x32   : > { %401 = vperm.xlu0 %939, %v384_v3   ;;  %943 = vset.pattern.permute.xlu2 %v1076_v6  ;;  %v1265_v55 = vperm.slane %v506_v34, 2  ;;  %v1267_v56 = vperm.slane %v507_v35, 2  ;;  %v531_v57 = vperm.slane %v859_v48, 0  ;;  %v532_v58 = vperm.slane %v859_v48, 4  ;;  %p1005_p6 = pnand %p1004_p5, %p1176_p9 }
  0x33   : > { %596 = vperm.xlu2 %943, %v580_v4   ;;  %v549_v59 = vperm.slane %v859_v48, 2  ;;  %v550_v60 = vperm.slane %v859_v48, 6  ;;  %v613_v61 = vperm.slane %v1229_v11, 2  ;;  %v614_v62 = vperm.slane %v1229_v11, 6  ;;  %p1010_p13 = por %p1009_p10, %p1008_p8 }
  0x34   : > { %v408_v63 = vperm.slane %v404_v44, 1  ;;  %v409_v0 = vperm.slane %v405_v45, 1  ;;  %v457_v3 = vperm.slane %v453_v51, 1  ;;  %v497_v12 = vperm.slane %v1238_v22, 5  ;;  %p1006_p7 = pneg %p1005_p6 }
  0x35   : > { %v516_v13 = vperm.slane %v1238_v22, 3  ;;  %v517_v14 = vperm.slane %v1238_v22, 7  ;;  %v1277_v17 = vperm.slane %v613_v61, 2  ;;  %v1279_v18 = vperm.slane %v614_v62, 2 }
  0x36   : > { %v539_v19 = vperm.slane %v859_v48, 1  ;;  %v540_v20 = vperm.slane %v859_v48, 5  ;;  %v627_v21 = vperm.slane %v1229_v11, 3  ;;  %v628_v23 = vperm.slane %v1229_v11, 7  ;;  %p1011_p0 = pnand %p1010_p13, %p1006_p7 }
  0x37   : > { %v559_v24 = vperm.slane %v859_v48, 3  ;;  %v560_v25 = vperm.slane %v859_v48, 7  ;;  %v536_v29 = vperm.slane %v532_v58, 0  ;;  %v501_v30 = vperm.slane %v497_v12, 1 }
  0x38   : > { %v521_v34 = vperm.slane %v517_v14, 3  ;;  %v543_v35 = vperm.slane %v539_v19, 1  ;;  %v544_v44 = vperm.slane %v540_v20, 1  ;;  %v553_v45 = vperm.slane %v549_v59, 2 }
  0x39   : > { %944 = vset.pattern.permute.xlu1 %v1073_v1  ;;  %v436_v1 = vperm.slane %v432_v49, 3  ;;  %v554_v49 = vperm.slane %v550_v60, 2  ;;  %v1285_v51 = vperm.slane %v628_v23, 3 }
  0x3a   : > { %946 = vset.pattern.permute.xlu0 %v1074_v2  ;;  %610 = vperm.xlu1 %944, %v580_v4  }
  0x3b   : > { %574 = vperm.xlu0 %946, %v571_v7   ;;  %945 = vset.pattern.permute.xlu2 %v1075_v5  ;;  %v477_v7 = vperm.slane %v473_v53, 3  ;;  %v1289_v53 = vperm.slane %v560_v25, 3 }
  0x3c   : > { %624 = vperm.xlu2 %945, %v580_v4   ;;  %v458_v4 = vperm.slane %v454_v52, 1  ;;  %v1287_v52 = vperm.slane %v559_v24, 3 }
  0x42   : > { %947 = vset.pattern.permute.xlu1 %v1074_v2 }
  0x43   : > { %640 = vperm.xlu1 %947, %v637_v8   ;;  %v478_v8 = vperm.slane %v474_v54, 3 }
  0x44   : > { %948 = vset.pattern.permute.xlu2 %v1074_v2  ;;  %v437_v2 = vperm.slane %v433_v50, 3  ;;  %v1283_v50 = vperm.slane %v627_v21, 3 }
  0x45   : > { %652 = vperm.xlu2 %948, %v649_v9  }
  0x4b   : > { %672 = vperm.xlu1 %947, %v669_v10   ;;  %v496_v10 = vperm.slane %v1238_v22, 1 }
  0x4d   : > { %v500_v22 = vperm.slane %v496_v10, 1 }
  0x83   : > { %v584_v31 = vpop.permute.xlu2 %583 }
  0x84   : > { %v593_v5 = vmul.f32 %v591_v27, %v584_v31  ;;  %v594_v6 = vmul.f32 %v592_v28, %v584_v31  ;;  %v535_v28 = vperm.slane %v531_v57, 0  ;;  %v520_v31 = vperm.slane %v516_v13, 3 }
  0x8d   : > { %v597_v9 = vpop.permute.xlu2 %596 }
  0x8e   : > { %v605_v26 = vmul.f32 %v603_v36, %v597_v9  ;;  %v606_v27 = vmul.f32 %v604_v37, %v597_v9 }
  0x90   : > { %v1291_v36 = vadd.f32 %v605_v26, %v593_v5  ;;  %v1293_v37 = vadd.f32 %v606_v27, %v594_v6 }
  0x9a   : > { %v1275_v15 = vpop.permute.xlu1 %415 }
  0x9b   : > { %v389_v16 = vpop.permute.xlu0 %388  ;;  %v424_v57 = vmul.f32 %v1242_v32, %v1275_v15  ;;  %v425_v58 = vmul.f32 %v1244_v33, %v1275_v15  ;;  %v469_v61 = vmul.f32 %v1248_v38, %v1275_v15  ;;  %v470_v62 = vmul.f32 %v1250_v39, %v1275_v15 }
  0x9c   : > { %v398_v48 = vmul.f32 %v1252_v40, %v389_v16  ;;  %v399_v54 = vmul.f32 %v1254_v41, %v389_v16  ;;  %v451_v59 = vmul.f32 %v1256_v42, %v389_v16  ;;  %v452_v60 = vmul.f32 %v1258_v43, %v389_v16 }
  0x9d   : > { %v494_v40 = vmul.f32 %v1260_v46, %v389_v16  ;;  %v495_v41 = vmul.f32 %v1262_v47, %v389_v16  ;;  %v512_v32 = vmul.f32 %v1265_v55, %v1275_v15  ;;  %v513_v33 = vmul.f32 %v1267_v56, %v1275_v15 }
  0x9e   : > { %v537_v42 = vmul.f32 %v535_v28, %v389_v16  ;;  %v538_v43 = vmul.f32 %v536_v29, %v389_v16 }
  0xa3   : > { %v430_v5 = vpop.permute.xlu1 %429 }
  0xa4   : > { %v402_v6 = vpop.permute.xlu0 %401  ;;  %v438_v38 = vmul.f32 %v436_v1, %v430_v5  ;;  %v439_v12 = vmul.f32 %v437_v2, %v430_v5  ;;  %v479_v14 = vmul.f32 %v477_v7, %v430_v5  ;;  %v480_v46 = vmul.f32 %v478_v8, %v430_v5 }
  0xa5   : > { %v410_v9 = vmul.f32 %v408_v63, %v402_v6  ;;  %v411_v10 = vmul.f32 %v409_v0, %v402_v6  ;;  %v459_v13 = vmul.f32 %v457_v3, %v402_v6  ;;  %v460_v39 = vmul.f32 %v458_v4, %v402_v6 }
  0xa6   : > { %v502_v20 = vmul.f32 %v500_v22, %v402_v6  ;;  %v503_v21 = vmul.f32 %v501_v30, %v402_v6  ;;  %v522_v55 = vmul.f32 %v520_v31, %v430_v5  ;;  %v523_v25 = vmul.f32 %v521_v34, %v430_v5 }
  0xa7   : > { %v412_v19 = vadd.f32 %v410_v9, %v398_v48  ;;  %v413_v47 = vadd.f32 %v411_v10, %v399_v54  ;;  %v461_v23 = vadd.f32 %v459_v13, %v451_v59  ;;  %v462_v24 = vadd.f32 %v460_v39, %v452_v60  ;;  %v625_v54 = vpop.permute.xlu2 %624 }
  0xa8   : > { %v504_v27 = vadd.f32 %v502_v20, %v494_v40  ;;  %v505_v16 = vadd.f32 %v503_v21, %v495_v41  ;;  %v545_v1 = vmul.f32 %v543_v35, %v402_v6  ;;  %v546_v2 = vmul.f32 %v544_v44, %v402_v6 }
  0xa9   : > { %v426_v26 = vadd.f32 %v424_v57, %v412_v19  ;;  %v427_v56 = vadd.f32 %v425_v58, %v413_v47  ;;  %v471_v63 = vadd.f32 %v469_v61, %v461_v23  ;;  %v472_v0 = vadd.f32 %v470_v62, %v462_v24 }
  0xaa   : > { %v514_v7 = vadd.f32 %v512_v32, %v504_v27  ;;  %v515_v8 = vadd.f32 %v513_v33, %v505_v16  ;;  %v547_v22 = vadd.f32 %v545_v1, %v537_v42  ;;  %v548_v30 = vadd.f32 %v546_v2, %v538_v43 }
  0xab   : > { %v440_v3 = vadd.f32 %v438_v38, %v426_v26  ;;  %v441_v4 = vadd.f32 %v439_v12, %v427_v56  ;;  %v481_v28 = vadd.f32 %v479_v14, %v471_v63  ;;  %v482_v29 = vadd.f32 %v480_v46, %v472_v0 }
  0xac   : > { %v611_v48 = vpop.permute.xlu1 %610  ;;  %v524_v31 = vadd.f32 %v522_v55, %v514_v7  ;;  %v525_v34 = vadd.f32 %v523_v25, %v515_v8  ;;  %v555_v57 = vmul.f32 %v553_v45, %v1275_v15  ;;  %v556_v58 = vmul.f32 %v554_v49, %v1275_v15 }
  0xad   : > { %v619_v59 = vmul.f32 %v1277_v17, %v611_v48  ;;  %v620_v35 = vmul.f32 %v1279_v18, %v611_v48  ;;  %v483_v44 = vmax.f32 %v440_v3, %v481_v28  ;;  %v484_v60 = vmax.f32 %v441_v4, %v482_v29  ;;  %v575_v9 = vpop.permute.xlu0 %574 }
  0xae   : > { %v557_v61 = vadd.f32 %v555_v57, %v547_v22  ;;  %v558_v62 = vadd.f32 %v556_v58, %v548_v30  ;;  %v565_v40 = vmul.f32 %v1287_v52, %v430_v5  ;;  %v566_v41 = vmul.f32 %v1289_v53, %v430_v5 }
  0xaf   : > { %v633_v6 = vmul.f32 %v1283_v50, %v625_v54  ;;  %v634_v32 = vmul.f32 %v1285_v51, %v625_v54  ;;  %v526_v33 = vmax.f32 %v483_v44, %v524_v31  ;;  %v527_v45 = vmax.f32 %v484_v60, %v525_v34  ;;  %v653_v39 = vpop.permute.xlu2 %652 }
  0xb0   : > { %v621_v15 = vadd.f32 %v619_v59, %v1291_v36  ;;  %v622_v17 = vadd.f32 %v620_v35, %v1293_v37  ;;  %v567_v49 = vadd.f32 %v565_v40, %v557_v61  ;;  %v568_v18 = vadd.f32 %v566_v41, %v558_v62 }
  0xb2   : > { %v569_v42 = vmax.f32 %v526_v33, %v567_v49  ;;  %v570_v43 = vmax.f32 %v527_v45, %v568_v18  ;;  %v635_v10 = vadd.f32 %v633_v6, %v621_v15  ;;  %v636_v38 = vadd.f32 %v634_v32, %v622_v17 }
  0xb4   : > { %v577_v12 = vadd.f32 %v575_v9, %v569_v42  ;;  %v578_v53 = vadd.f32 %v575_v9, %v570_v43 }
  0xb5   : > { %v641_v52 = vpop.permute.xlu1 %640 }
  0xb6   : > { %v643_v5 = vadd.f32 %v641_v52, %v635_v10  ;;  %v644_v50 = vadd.f32 %v641_v52, %v636_v38 }
  0xb8   : > { %v645_v13 = vadd.f32 %v643_v5, %v577_v12  ;;  %v646_v51 = vadd.f32 %v644_v50, %v578_v53 }
  0xba   : > { %v647_v14 = vmax.f32 %v645_v13, 0.0  ;;  %v648_v46 = vmax.f32 %v646_v51, 0.0 }
  0xbc   : > { %v655_v36 = vmul.f32 %v653_v39, %v647_v14  ;;  %v656_v19 = vmul.f32 %v653_v39, %v648_v46 }
  0xbd   : > { %v673_v26 = vpop.permute.xlu1 %672 }
  0xbe   : > { %v657_v37 = vrot.slane %v655_v36, 4  ;;  %v663_v47 = vrot.slane %v656_v19, 4  ;;  %v675_v0 = vperm.slane %v673_v26, 0 }
  0xc0   : > { %v658_v20 = vadd.f32 %v657_v37, %v655_v36  ;;  %v664_v21 = vadd.f32 %v663_v47, %v656_v19 }
  0xc2   : > { %v659_v23 = vrot.slane %v658_v20, 2  ;;  %v665_v24 = vrot.slane %v664_v21, 2 }
  0xc4   : > { %v660_v55 = vadd.f32 %v659_v23, %v658_v20  ;;  %v666_v25 = vadd.f32 %v665_v24, %v664_v21 }
  0xc6   : > { %v661_v56 = vrot.slane %v660_v55, 1  ;;  %v667_v27 = vrot.slane %v666_v25, 1 }
  0xc8   : > { %v662_v16 = vadd.f32 %v661_v56, %v660_v55  ;;  %v668_v63 = vadd.f32 %v667_v27, %v666_v25 }
  0xca   : > { %v676_v1 = vadd.f32 %v675_v0, %v662_v16  ;;  %v677_v2 = vadd.f32 %v675_v0, %v668_v63 }
  0xcc   : > { %v860_v3 = vmul.f32 -1.442695, %v676_v1  ;;  %v861_v4 = vmul.f32 -1.442695, %v677_v2 }
  0xce   : > { %949 = vpow2.f32 %v860_v3 }
  0xcf   : > { %951 = vpow2.f32 %v861_v4 }
  0xd4   : > { %v950_v7 = vpop.eup %949 }
  0xd5   : > { %v952_v8 = vpop.eup %951  ;;  %v684_v28 = vadd.f32 1.0, %v950_v7 }
  0xd6   : > { %v685_v29 = vadd.f32 1.0, %v952_v8 }
  0xd7   : > { %953 = vrcp.f32 %v684_v28  ;;  %vm691_vm2 = vweird.f32 %v684_v28  ;;  %v697_v44 = vand.u32 2147483648, %v684_v28  ;;  %v695_v40 = vand.u32 2147483647, %v684_v28 }
  0xd8   : > { %955 = vrcp.f32 %v685_v29  ;;  %v712_v58 = vand.u32 2147483648, %v685_v29  ;;  %v710_v35 = vand.u32 2147483647, %v685_v29  ;;  %vm706_vm3 = vweird.f32 %v685_v29 }
  0xd9   : > { %v698_v33 = vor.u32 1.1754944e-38, %v697_v44  ;;  %vm696_vm8 = vcmp.eq.f32.partialorder %v695_v40, 8.507059e+37 }
  0xda   : > { %v713_v41 = vor.u32 1.1754944e-38, %v712_v58  ;;  %vm711_vm6 = vcmp.eq.f32.partialorder %v710_v35, 8.507059e+37 }
  0xdd   : > { %v954_v22 = vpop.eup %953 }
  0xde   : > { %v956_v30 = vpop.eup %955  ;;  %v687_v48 = vmul.f32 %v954_v22, %v684_v28  ;;  %vm692_vm0 = vweird.f32 %v954_v22 }
  0xdf   : > { %v702_v54 = vmul.f32 %v956_v30, %v685_v29  ;;  %vm707_vm1 = vweird.f32 %v956_v30  ;;  %vm1325_vm4 = vmor %vm691_vm2, %vm692_vm0 }
  0xe0   : > { %v688_v31 = vsub.f32 1.0, %v687_v48  ;;  %vm708_vm5 = vmor %vm706_vm3, %vm707_vm1 }
  0xe1   : > { %v703_v34 = vsub.f32 1.0, %v702_v54 }
  0xe2   : > { %v689_v57 = vmul.f32 %v954_v22, %v688_v31 }
  0xe3   : > { %v704_v59 = vmul.f32 %v956_v30, %v703_v34 }
  0xe4   : > { %v690_v60 = vadd.f32 %v954_v22, %v689_v57 }
  0xe5   : > { %v705_v61 = vadd.f32 %v956_v30, %v704_v59 }
  0xe6   : > { %v694_v6 = vsel %vm1325_vm4, %v954_v22, %v690_v60 }
  0xe7   : > { %v709_v32 = vsel %vm708_vm5, %v956_v30, %v705_v61  ;;  %v699_v17 = vsel %vm696_vm8, %v698_v33, %v694_v6 }
  0xe8   : > { %v714_v45 = vsel %vm711_vm6, %v713_v41, %v709_v32 }
  0xe9   : > { %v718_v15 = vrot.slane %v714_v45, 4 }
  0xeb   : > { %v720_v49 = vsel %vm719_vm7, %v699_v17, %v718_v15 }
  0xec   : > { %v722_v18 = vmul.f32 %v720_v49, %v1229_v11 }
  0xee   : > { %723 = vst [vmem:[%s371_s10] sm:$0xff] %v722_v18 }
  0xef   : > { %1014 = shalt.err (!%p1011_p0)
}
  0xf0   : > { %872 = dma.vmem_to_hbm [thread:$0]  (%p1176_p9), %s741_s28, 128, %s743_s7, %s725_s17  }
  0xf1 PF: > { %s754_s11 = sand.u32 1, %s1049_s29   ;;  %p879_p1 = pnand %p848_p12, %p1183_p11 }
  0xf2   : > { %s755_s22 = scalar_lea.sflag [#allocation5], %s754_s11 }
  0xf3   : > { %p880_p2 = pneg %p879_p1 }
  0xf5   : > { %1044 = dma.done.wait (%p880_p2), %s755_s22, 128  }
  0xf6   : > { %1046 = vsyncadd (%p880_p2), %s755_s22, 4294967168  ;;  %s26_s12 = sadd.s32 1, %s1069_s12   ;;  %s1388_s10 = sld [smem:[#allocation9_spill]] }
  0xf7   : > { %p23_p3 = scmp.ge.s32.totalorder %s26_s12, 4   ;;  %s1389_s11 = sld [smem:[#allocation10_spill]] }
  0xf8   : > { %s1390_s29 = smov %s1053_s30  ;;  %s1391_s30 = smov %s1057_s9 }
  0xf9   : > { %s1392_s9 = smov %s1181_s20  ;;  %25 = sbr.rel (!%p23_p3) target bundleno = 9 (0x9), region = 103 }
  0xfe   :  { %761 = vsyncpa [#allocation4], 1 }
  0xff   :  { %763 = vsyncpa [#allocation4 + $0x1], 1 }
 0x100   :  { %764 = vsyncpa [#allocation5], 1 }
 0x101   :  { %766 = vsyncpa [#allocation5 + $0x1], 1 }

</bundles_post_ra>
